<compile_context>
chip_gen: v6e
topology: v6e:2x2x1
jax: 0.10.0
libtpu: 0.0.40
codegen_flags: <defaults>
</compile_context>

<pallas_src>
import functools

import jax
import jax.numpy as jnp
from jax import lax
from jax.experimental import pallas as pl
from jax.experimental.pallas import tpu as pltpu


def _contrastive_kernel(sess_ref, lc_ref, neg_idx_ref, out_ref, *, temperature):
    """Scalar contrastive loss for the whole (small) batch.

    sess_ref, lc_ref : (B, D) VMEM tiles (embeddings)
    neg_idx_ref      : (B, 1) int32 VMEM tile (derangement indices)
    out_ref          : (1, 1) f32 VMEM output
    """
    eps = jnp.float32(1e-12)  # matches torch.nn.functional.normalize default eps
    inv_t = jnp.float32(1.0 / temperature)

    s = sess_ref[...]
    p = lc_ref[...]
    # v5e has no bf16 VPU/EUP path -> run the normalization chain in f32.
    # TODO(synk): on v6e/v7x keep bf16 operands for the MXU one-hot gather and
    # only up-cast the normalization/EUP path (halves HBM->VMEM bytes).
    if s.dtype != jnp.float32:
        s = s.astype(jnp.float32)
    if p.dtype != jnp.float32:
        p = p.astype(jnp.float32)

    B = s.shape[0]

    # Row-wise sum-of-squares (lane reductions); reciprocal norms on the EUP.
    # rsqrt(max(ss, eps^2)) == 1 / max(||x||_2, eps) since sqrt is monotone.
    ss = jnp.sum(s * s, axis=-1, keepdims=True)
    pp = jnp.sum(p * p, axis=-1, keepdims=True)
    inv_ns = lax.rsqrt(jnp.maximum(ss, eps * eps))
    inv_np = lax.rsqrt(jnp.maximum(pp, eps * eps))

    # Fold 1/temperature into sess's normalization scale: one (B, D) multiply.
    s_hat = s * (inv_ns * inv_t)
    p_n = p * inv_np

    # Positive pair: direct row-wise dot product (no sim matrix, no iota/select).
    pos_sim = jnp.sum(s_hat * p_n, axis=-1, keepdims=True)            # (B, 1)

    # Negative pair: one-hot gather of l_c rows on the MXU, then row-wise dot.
    col = lax.broadcasted_iota(jnp.int32, (B, B), 1)
    onehot = (col == neg_idx_ref[...]).astype(jnp.float32)            # (B, B)
    p_neg = jnp.dot(onehot, p_n, preferred_element_type=jnp.float32)  # (B, D) MXU
    neg_sim = jnp.sum(s_hat * p_neg, axis=-1, keepdims=True)          # (B, 1)

    def softplus(x):
        # -logsigmoid(x) = softplus(-x); stable: max(x,0) + log1p(exp(-|x|))
        return jnp.maximum(x, 0.0) + jnp.log1p(jnp.exp(-jnp.abs(x)))

    positive_loss = softplus(-pos_sim)   # -logsigmoid(pos_sim)  (already / T)
    negative_loss = softplus(neg_sim)    # -logsigmoid(-neg_sim)

    # mean over the batch -> (1, 1) via keepdims sublane reduce + scale.
    out_ref[...] = jnp.sum(positive_loss + negative_loss, axis=0,
                           keepdims=True) * jnp.float32(1.0 / B)


def _make_derangement(key, n):
    """Deterministic equivalent of the torch.randperm rejection loop (no fixed
    points).  Host-side glue only: the `while bool(...)` forces a host sync,
    so do NOT call this inside a jitted step."""
    arange = jnp.arange(n)
    perm = jax.random.permutation(key, n)
    while bool(jnp.any(perm == arange)):
        key, sub = jax.random.split(key)
        perm = jax.random.permutation(sub, n)
    return perm


def contrastive_loss(sess_final, l_c, neg_indices, temperature=0.5):
    """Wrapper: raw embeddings + tiny index vector -> Pallas kernel -> scalar."""
    assert sess_final.shape == l_c.shape and sess_final.ndim == 2
    B, _ = sess_final.shape
    neg_idx = neg_indices.astype(jnp.int32).reshape(B, 1)

    kernel = functools.partial(_contrastive_kernel, temperature=float(temperature))
    out = pl.pallas_call(
        kernel,
        out_shape=jax.ShapeDtypeStruct((1, 1), jnp.float32),
        in_specs=[
            pl.BlockSpec(memory_space=pltpu.MemorySpace.VMEM),
            pl.BlockSpec(memory_space=pltpu.MemorySpace.VMEM),
            pl.BlockSpec(memory_space=pltpu.MemorySpace.VMEM),
        ],
        out_specs=pl.BlockSpec(memory_space=pltpu.MemorySpace.VMEM),
    )(sess_final, l_c, neg_idx)
    return out[0, 0]


if __name__ == "__main__":
    B, D = 8, 32  # small shapes: batch=8, hidden=32 (D=32 -> 25% lane fill; OK here)
    temperature = 0.5

    key = jax.random.PRNGKey(0)
    k1, k2, k3 = jax.random.split(key, 3)
    sess_final = jax.random.normal(k1, (B, D), dtype=jnp.float32)
    l_c = jax.random.normal(k2, (B, D), dtype=jnp.float32)

    # Deterministic derangement (random permutation with no fixed points),
    # mirroring the torch.randperm rejection loop in the module's forward.
    neg_indices = _make_derangement(k3, B)

    loss = contrastive_loss(sess_final, l_c, neg_indices, temperature)
    jax.block_until_ready(loss)

    # Sanity check against a pure-JAX reference.
    def _ref(sess_final, l_c, neg_indices, temperature):
        eps = 1e-12
        sn = sess_final / jnp.maximum(
            jnp.linalg.norm(sess_final, axis=-1, keepdims=True), eps)
        ln = l_c / jnp.maximum(jnp.linalg.norm(l_c, axis=-1, keepdims=True), eps)
        pos = jnp.sum(sn * ln, axis=-1)
        neg = jnp.sum(sn * ln[neg_indices], axis=-1)
        pl_ = -jax.nn.log_sigmoid(pos / temperature)
        nl_ = -jax.nn.log_sigmoid(-neg / temperature)
        return jnp.mean(pl_ + nl_)

    ref = _ref(sess_final, l_c, neg_indices, temperature)
    # rsqrt runs on the EUP (slightly approximate vs sqrt+divide) -> modest tol.
    assert jnp.allclose(loss, ref, rtol=1e-4, atol=1e-5), (loss, ref)

    print("KERNEL_OK")
</pallas_src>

<mosaic_0001>
module attributes {stable_mosaic.version = 11 : i64} {
  func.func @_contrastive_kernel(%arg0: memref<8x32xf32, #tpu.memory_space<vmem>>, %arg1: memref<8x32xf32, #tpu.memory_space<vmem>>, %arg2: memref<8x1xi32, #tpu.memory_space<vmem>>, %arg3: memref<1x1xf32, #tpu.memory_space<vmem>>) attributes {dimension_semantics = [], scalar_prefetch = 0 : i64, scratch_operands = 0 : i64, tpu.core_type = #tpu.core_type<tc>} {
    %c0 = arith.constant 0 : index
    %c0_0 = arith.constant 0 : index
    %0 = vector.load %arg0[%c0, %c0_0] : memref<8x32xf32, #tpu.memory_space<vmem>>, vector<8x32xf32>
    %c0_1 = arith.constant 0 : index
    %c0_2 = arith.constant 0 : index
    %1 = vector.load %arg1[%c0_1, %c0_2] : memref<8x32xf32, #tpu.memory_space<vmem>>, vector<8x32xf32>
    %2 = arith.mulf %0, %0 : vector<8x32xf32>
    %cst = arith.constant dense<0.000000e+00> : vector<8xf32>
    %3 = vector.multi_reduction <add>, %2, %cst [1] : vector<8x32xf32> to vector<8xf32>
    %4 = vector.shape_cast %3 : vector<8xf32> to vector<8x1xf32>
    %5 = arith.mulf %1, %1 : vector<8x32xf32>
    %cst_3 = arith.constant dense<0.000000e+00> : vector<8xf32>
    %6 = vector.multi_reduction <add>, %5, %cst_3 [1] : vector<8x32xf32> to vector<8xf32>
    %7 = vector.shape_cast %6 : vector<8xf32> to vector<8x1xf32>
    %cst_4 = arith.constant 9.99999996E-13 : f32
    %cst_5 = arith.constant 9.99999996E-13 : f32
    %8 = arith.mulf %cst_4, %cst_5 : f32
    %9 = vector.broadcast %8 : f32 to vector<8x1xf32>
    %10 = arith.maximumf %4, %9 : vector<8x1xf32>
    %11 = math.rsqrt %10 : vector<8x1xf32>
    %cst_6 = arith.constant 9.99999996E-13 : f32
    %cst_7 = arith.constant 9.99999996E-13 : f32
    %12 = arith.mulf %cst_6, %cst_7 : f32
    %13 = vector.broadcast %12 : f32 to vector<8x1xf32>
    %14 = arith.maximumf %7, %13 : vector<8x1xf32>
    %15 = math.rsqrt %14 : vector<8x1xf32>
    %cst_8 = arith.constant 2.000000e+00 : f32
    %16 = vector.broadcast %cst_8 : f32 to vector<8x1xf32>
    %17 = arith.mulf %11, %16 : vector<8x1xf32>
    %18 = vector.broadcast %17 : vector<8x1xf32> to vector<8x32xf32>
    %19 = arith.mulf %0, %18 : vector<8x32xf32>
    %20 = vector.broadcast %15 : vector<8x1xf32> to vector<8x32xf32>
    %21 = arith.mulf %1, %20 : vector<8x32xf32>
    %22 = arith.mulf %19, %21 : vector<8x32xf32>
    %cst_9 = arith.constant dense<0.000000e+00> : vector<8xf32>
    %23 = vector.multi_reduction <add>, %22, %cst_9 [1] : vector<8x32xf32> to vector<8xf32>
    %24 = vector.shape_cast %23 : vector<8xf32> to vector<8x1xf32>
    %25 = tpu.iota {dimensions = array<i32: 1>} : vector<8x8xi32>
    %c0_10 = arith.constant 0 : index
    %c0_11 = arith.constant 0 : index
    %26 = vector.load %arg2[%c0_10, %c0_11] : memref<8x1xi32, #tpu.memory_space<vmem>>, vector<8x1xi32>
    %27 = vector.broadcast %26 : vector<8x1xi32> to vector<8x8xi32>
    %28 = arith.cmpi eq, %25, %27 : vector<8x8xi32>
    %29 = arith.extui %28 : vector<8x8xi1> to vector<8x8xi32>
    %30 = arith.sitofp %29 : vector<8x8xi32> to vector<8x8xf32>
    %cst_12 = arith.constant dense<0.000000e+00> : vector<8x32xf32>
    %31 = tpu.matmul %30, %21, %cst_12 {dimension_numbers = #tpu.dot_dimension_numbers<[1], [0], [0], [1], [0, 0, 1, 1], [], []>} : vector<8x8xf32>, vector<8x32xf32>, vector<8x32xf32> -> vector<8x32xf32>
    %32 = arith.mulf %19, %31 : vector<8x32xf32>
    %cst_13 = arith.constant dense<0.000000e+00> : vector<8xf32>
    %33 = vector.multi_reduction <add>, %32, %cst_13 [1] : vector<8x32xf32> to vector<8xf32>
    %34 = vector.shape_cast %33 : vector<8xf32> to vector<8x1xf32>
    %cst_14 = arith.constant 0.000000e+00 : f32
    %35 = vector.broadcast %cst_14 : f32 to vector<8x1xf32>
    %36 = arith.subf %35, %24 : vector<8x1xf32>
    %cst_15 = arith.constant 0.000000e+00 : f32
    %37 = vector.broadcast %cst_15 : f32 to vector<8x1xf32>
    %38 = arith.maximumf %36, %37 : vector<8x1xf32>
    %39 = math.absf %36 : vector<8x1xf32>
    %cst_16 = arith.constant 0.000000e+00 : f32
    %40 = vector.broadcast %cst_16 : f32 to vector<8x1xf32>
    %41 = arith.subf %40, %39 : vector<8x1xf32>
    %42 = math.exp %41 : vector<8x1xf32>
    %43 = math.log1p %42 : vector<8x1xf32>
    %44 = arith.addf %38, %43 : vector<8x1xf32>
    %cst_17 = arith.constant 0.000000e+00 : f32
    %45 = vector.broadcast %cst_17 : f32 to vector<8x1xf32>
    %46 = arith.maximumf %34, %45 : vector<8x1xf32>
    %47 = math.absf %34 : vector<8x1xf32>
    %cst_18 = arith.constant 0.000000e+00 : f32
    %48 = vector.broadcast %cst_18 : f32 to vector<8x1xf32>
    %49 = arith.subf %48, %47 : vector<8x1xf32>
    %50 = math.exp %49 : vector<8x1xf32>
    %51 = math.log1p %50 : vector<8x1xf32>
    %52 = arith.addf %46, %51 : vector<8x1xf32>
    %53 = arith.addf %44, %52 : vector<8x1xf32>
    %cst_19 = arith.constant dense<0.000000e+00> : vector<1xf32>
    %54 = vector.multi_reduction <add>, %53, %cst_19 [0] : vector<8x1xf32> to vector<1xf32>
    %55 = vector.shape_cast %54 : vector<1xf32> to vector<1x1xf32>
    %cst_20 = arith.constant 1.250000e-01 : f32
    %56 = vector.broadcast %cst_20 : f32 to vector<1x1xf32>
    %57 = arith.mulf %55, %56 : vector<1x1xf32>
    %c0_21 = arith.constant 0 : index
    %c0_22 = arith.constant 0 : index
    %58 = vector.load %arg3[%c0_21, %c0_22] : memref<1x1xf32, #tpu.memory_space<vmem>>, vector<1x1xf32>
    tpu.vector_store %arg3[%c0_21, %c0_22], %57 {strides = array<i32>} : memref<1x1xf32, #tpu.memory_space<vmem>>, vector<1x1xf32>,
    return
  }
}

</mosaic_0001>

<bundles_post_ra>
// kernel: tpu_custom_call.1
= control target key start
LH: loop header
LB: loop body
LE: loop exit
PB: predicated region body
PF: predicated region fallthrough
CT: control target
= control target key end

     0   :  { %8 = vsyncpa [#allocation3], 0  ;;  %s304_s0 = inlined_call_operand.vmem [shape: f32[8,32], index: 0, kind: input, shape index: {}]   ;;  %s305_s1 = inlined_call_operand.hbm [shape: f32[8,32], index: 1, kind: input, shape index: {}]   ;;  %s306_s2 = inlined_call_operand.vmem [shape: s32[8,1], index: 2, kind: input, shape index: {}]   ;;  %s307_s3 = inlined_call_operand.hbm [shape: f32[1,1], index: 3, kind: output, shape index: {}]  }
   0x1   :  { %9 = vsyncpa [#allocation4], 0  ;;  %s263_s12 = smov [#allocation2]  }
   0x2   :  { %s18_s13 = sshll.u32 %s263_s12, 4  ;;  %s19_s13 = int_to_ptr.vmem [resolvable:$true] %s18_s13 }
   0x3   :  { %s227_s14 = scalar_lea.vmem %s19_s13, 128  ;;  %p232_p1 = scmp.lt.s32.totalorder %s19_s13, %s19_s13 }
   0x4   :  { %p228_p0 = scmp.ne.s32.totalorder %s19_s13, %s227_s14  ;;  %p233_p2 = scmp.lt.s32.totalorder %s227_s14, %s227_s14 }
   0x6   :  { %p234_p3 = por %p233_p2, %p232_p1 }
   0x8   :  { %p235_p4 = pnand %p234_p3, %p228_p0 }
   0xa   :  { %238 = shalt.err (!%p235_p4)
}
   0xb   :  { %21 = dma.hbm_to_vmem [thread:$0]  %s305_s1, 128, %s19_s13, [#allocation3]  }
   0xc   :  { %259 = dma.done.wait [#allocation3], 128  }
   0xd   :  { %260 = vsyncadd [#allocation3], 4294967168  ;;  %v264_v0 = vmov 0   ;;  %v28_v1 = vld [vmem:[#allocation2] sm:$0xff]  ;;  %vm30_vm0 = vcmask 261120   ;;  %v265_v8 = vmov 0.0   ;;  %v49_v13 = vlaneseq }
   0xe   :  { %206 = vset.pattern.permute.xlu0 %v264_v0  ;;  %v27_v2 = vld [vmem:[%s304_s0] sm:$0xff]  ;;  %v34_v3 = vmul.f32 %v28_v1, %v28_v1  ;;  %196 = vmatprep.subr.mxu0 %v265_v8  ;;  %vm266_vm1 = vmmov 0   ;;  %vm58_vm3 = vcmask 64512   ;;  %s267_s0 = smov [#allocation5]   ;;  %vm175_vm6 = vcmask 0  }
   0xf   :  { %v29_v4 = vmul.f32 %v27_v2, %v27_v2  ;;  %v51_v7 = vld [vmem:[%s306_s2] sm:$0xff]  ;;  %198 = vmatprep.mubr.msk.f32.mxu0 %vm266_vm1, %v265_v8  ;;  %v50_v14 = vand.u32 127, %v49_v13  ;;  %s183_s2 = sshll.u32 %s267_s0, 4  ;;  %s184_s2 = int_to_ptr.vmem [resolvable:$true] %s183_s2 }
  0x10   :  { %v35_v5 = vsel %vm30_vm0, %v34_v3, 0.0  ;;  %s239_s20 = scalar_lea.vmem %s184_s2, 16  ;;  %s243_s21 = scalar_lea.vmem %s184_s2, 32 }
  0x11   :  { %v31_v6 = vsel %vm30_vm0, %v29_v4, 0.0  ;;  %36 = vadd.xlane.f32.xlu0 %v35_v5  ;;  %p240_p5 = scmp.ne.s32.totalorder %s184_s2, %s239_s20  ;;  %p244_p6 = scmp.lt.s32.totalorder %s184_s2, %s184_s2 }
  0x12   :  { %32 = vadd.xlane.f32.xlu1 %v31_v6  ;;  %p245_p7 = scmp.lt.s32.totalorder %s243_s21, %s239_s20 }
  0x14   :  { %p246_p8 = por %p245_p7, %p244_p6 }
  0x16   :  { %p247_p9 = pnand %p246_p8, %p240_p5 }
  0x27   :  { %53 = vperm.xlu0 %206, %v51_v7  }
  0x9a   :  { %v37_v9 = vpop.xlane.xlu0 %36 }
  0x9b   :  { %v33_v10 = vpop.xlane.xlu1 %32  ;;  %v40_v11 = vmax.f32 %v37_v9, 1e-24 }
  0x9c   :  { %v38_v12 = vmax.f32 %v33_v10, 1e-24 }
  0x9d   :  { %207 = vrsqrt.f32 %v40_v11 }
  0x9e   :  { %209 = vrsqrt.f32 %v38_v12 }
  0xa2   :  { %v54_v15 = vpop.permute.xlu0 %53 }
  0xa3   :  { %vm55_vm2 = vcmp.eq.s32.totalorder %v50_v14, %v54_v15 }
  0xa4   :  { %v192_v18 = vsel %vm55_vm2, 1.0, %v265_v8 }
  0xaa   :  { %v208_v16 = vpop.eup %207 }
  0xab   :  { %v210_v17 = vpop.eup %209  ;;  %v44_v19 = vmul.f32 %v208_v16, %v28_v1 }
  0xac   :  { %v42_v20 = vmul.f32 2.0, %v210_v17 }
  0xad   :  { %197 = vmatpush3.msra.mxu0 %v44_v19 }
  0xae   :  { %199 = vmatmul.mubr.msk.f32.vlgmr.msra.gmra.mxu0 %vm58_vm3, %v192_v18  ;;  %v43_v21 = vmul.f32 %v42_v20, %v27_v2 }
  0xb0   :  { %v45_v22 = vmul.f32 %v44_v19, %v43_v21 }
  0xb2   :  { %v46_v23 = vsel %vm30_vm0, %v45_v22, 0.0 }
  0xb3   :  { %47 = vadd.xlane.f32.xlu1 %v46_v23 }
 0x13c   :  { %v48_v28 = vpop.xlane.xlu1 %47 }
 0x13d   :  { %v136_v29 = vsub.f32 0.0, %v48_v28 }
 0x13f   :  { %v138_v30 = vand.u32 2147483647, %v136_v29  ;;  %v137_v54 = vmax.f32 %v136_v29, 0.0 }
 0x141   :  { %v139_v31 = vsub.f32 0.0, %v138_v30 }
 0x143   :  { %v140_v32 = vmul.f32 1.442695, %v139_v31 }
 0x145   :  { %211 = vpow2.f32 %v140_v32 }
 0x152   :  { %v212_v37 = vpop.eup %211 }
 0x153   :  { %v142_v38 = vadd.f32 1.0, %v212_v37  ;;  %v145_v41 = vmul.f32 -0.5, %v212_v37  ;;  %v148_v45 = vand.u32 2147483647, %v212_v37 }
 0x155   :  { %v146_v44 = vadd.f32 1.0, %v145_v41  ;;  %vm149_vm4 = vcmp.lt.f32.partialorder %v148_v45, 0.0004427343 }
 0x157   :  { %v147_v49 = vmul.f32 %v212_v37, %v146_v44 }
 0x16e   :  { %v128_v24 = vpop.f32.mrf.mxu0 }
 0x16f   :  { %v132_v25 = vmul.f32 %v128_v24, %v43_v21 }
 0x170   :  { %v200_v26 = vpop.f32.mrf.mxu0 }
 0x171   :  { %v133_v27 = vsel %vm30_vm0, %v132_v25, 0.0 }
 0x172   :  { %134 = vadd.xlane.f32.xlu1 %v133_v27 }
 0x1fb   :  { %v135_v33 = vpop.xlane.xlu1 %134 }
 0x1fc   :  { %v153_v34 = vand.u32 2147483647, %v135_v33  ;;  %v152_v55 = vmax.f32 %v135_v33, 0.0 }
 0x1fe   :  { %v154_v35 = vsub.f32 0.0, %v153_v34 }
 0x200   :  { %v155_v36 = vmul.f32 1.442695, %v154_v35 }
 0x202   :  { %213 = vpow2.f32 %v155_v36 }
 0x203   :  { %215 = vlog2.f32 %v142_v38 }
 0x20f   :  { %v214_v39 = vpop.eup %213 }
 0x210   :  { %v157_v40 = vadd.f32 1.0, %v214_v39  ;;  %v160_v42 = vmul.f32 -0.5, %v214_v39  ;;  %v216_v43 = vpop.eup %215  ;;  %v163_v48 = vand.u32 2147483647, %v214_v39 }
 0x211   :  { %v144_v46 = vmul.f32 0.6931472, %v216_v43 }
 0x212   :  { %217 = vlog2.f32 %v157_v40  ;;  %v161_v47 = vadd.f32 1.0, %v160_v42  ;;  %vm164_vm5 = vcmp.lt.f32.partialorder %v163_v48, 0.0004427343 }
 0x213   :  { %v150_v51 = vsel %vm149_vm4, %v147_v49, %v144_v46 }
 0x214   :  { %v162_v53 = vmul.f32 %v214_v39, %v161_v47  ;;  %v151_v57 = vadd.f32 %v150_v51, %v137_v54 }
 0x21f   :  { %v218_v50 = vpop.eup %217 }
 0x220   :  { %v159_v52 = vmul.f32 0.6931472, %v218_v50 }
 0x222   :  { %v165_v56 = vsel %vm164_vm5, %v162_v53, %v159_v52 }
 0x223   :  { %v166_v58 = vadd.f32 %v165_v56, %v152_v55 }
 0x225   :  { %v167_v59 = vadd.f32 %v166_v58, %v151_v57 }
 0x227   :  { %v168_v60 = vrot.slane %v167_v59, 4 }
 0x229   :  { %v169_v61 = vadd.f32 %v168_v60, %v167_v59 }
 0x22b   :  { %v170_v62 = vrot.slane %v169_v61, 2 }
 0x22d   :  { %v171_v63 = vadd.f32 %v170_v62, %v169_v61 }
 0x22f   :  { %v172_v0 = vrot.slane %v171_v63, 1 }
 0x231   :  { %v173_v1 = vadd.f32 %v172_v0, %v171_v63 }
 0x233   :  { %v174_v2 = vmul.f32 0.125, %v173_v1 }
 0x235   :  { %176 = vst.msk [vmem:[#allocation5] sm:$0x1] %vm175_vm6, %v174_v2 }
 0x236   :  { %250 = shalt.err (!%p247_p9)
}
 0x237   :  { %186 = dma.vmem_to_hbm [thread:$0]  %s184_s2, 16, %s307_s3, [#allocation4]  }
 0x238   :  { %261 = dma.done.wait [#allocation4], 16  }
 0x239   :  { %262 = vsyncadd [#allocation4], 4294967280 }
 0x23a   :  { %190 = vsyncpa [#allocation3], 1 }
 0x23b   :  { %191 = vsyncpa [#allocation4], 1 }

</bundles_post_ra>
